<compile_context>
chip_gen: v7x
topology: tpu7x:2x2x1
jax: 0.10.0
libtpu: 0.0.40
codegen_flags: <defaults>
</compile_context>

<pallas_src>
import jax
import jax.numpy as jnp
from jax.experimental import pallas as pl
from jax.experimental.pallas import tpu as pltpu


def _se_kernel(x_ref, pool_ref, w1_ref, w2_ref, expand_ref, o_ref):
    # x_ref / o_ref: (TB, C*L) lane-dense tiles.  Weight refs hold whole (tiny)
    # matrices and are resident across all grid steps (index_map is constant).
    # Squeeze: mean over L as a matmul with the constant pooling matrix.
    y = jnp.dot(x_ref[...], pool_ref[...],
                preferred_element_type=jnp.float32)                       # (TB, C)
    # Excitation: Linear(C -> C//r, no bias) -> ReLU -> Linear -> sigmoid.
    # (Operands could be cast to bf16 for the v6e/v7x MXU, but the kernel is
    #  HBM-bound -- MXU work is free filler -- and f32 keeps the gate tight.)
    h = jnp.maximum(
        jnp.dot(y, w1_ref[...], preferred_element_type=jnp.float32), 0.0)  # (TB, Cr)
    s = jax.nn.sigmoid(
        jnp.dot(h, w2_ref[...], preferred_element_type=jnp.float32))       # (TB, C)
    # Broadcast each channel's gate over its L positions via a 0/1 matrix.
    gate = jnp.dot(s, expand_ref[...],
                   preferred_element_type=jnp.float32)                    # (TB, C*L)
    # Scale.  Re-read x from VMEM rather than keeping the earlier tile live.
    o_ref[...] = (x_ref[...] * gate).astype(o_ref.dtype)


def se_layer(x, w1, w2, *, block_rows=None, tile_target_bytes=2 << 20):
    """Fused SE layer.  x: (B, C, L); w1: (C, C//r); w2: (C//r, C)."""
    B, C, L = x.shape
    Cr = w1.shape[1]
    assert w1.shape == (C, Cr) and w2.shape == (Cr, C)
    CL = C * L

    # Lane-dense view: (B, C, L) -> (B, C*L) is a free row-major reshape.
    x2 = x.reshape(B, CL)

    # Constant pooling / broadcast matrices (built once, outside the kernel).
    expand = jnp.repeat(jnp.eye(C, dtype=jnp.float32), L, axis=1)   # (C, C*L)
    pool = expand.T * jnp.float32(1.0 / L)                          # (C*L, C)

    itemsize = jnp.dtype(x.dtype).itemsize
    row_bytes = CL * itemsize
    if block_rows is None:
        if B * row_bytes <= tile_target_bytes:
            block_rows = B                          # single block == full batch
        else:
            block_rows = max(8, min(B, (tile_target_bytes // row_bytes) // 8 * 8))
    nb = pl.cdiv(B, block_rows)

    # VMEM budget: in + out tiles are each double-buffered, plus weights and
    # headroom; cap below v7x's 64 MiB physical VMEM (v5e/v6e have 128 MiB).
    tile_bytes = block_rows * row_bytes
    weight_bytes = 4 * (pool.size + expand.size + w1.size + w2.size)
    vmem_limit = int(min(max(6 * tile_bytes + 2 * weight_bytes + (4 << 20),
                             16 << 20), 48 << 20))

    flops = 2 * B * CL * C                     # pooling matmul
    flops += 2 * B * (C * Cr + Cr * C)         # the two excitation matmuls
    flops += 2 * B * C * CL + B * CL           # gate-broadcast matmul + scale
    cost = pl.CostEstimate(
        flops=int(flops),
        transcendentals=int(B * C),            # sigmoid
        bytes_accessed=int(2 * B * CL * itemsize + weight_bytes))

    grid_spec = pltpu.PrefetchScalarGridSpec(
        num_scalar_prefetch=0,
        grid=(nb,),
        in_specs=[
            pl.BlockSpec((block_rows, CL), lambda i: (i, 0)),   # x tile (pipelined)
            pl.BlockSpec((CL, C), lambda i: (0, 0)),            # pool  (resident)
            pl.BlockSpec((C, Cr), lambda i: (0, 0)),            # w1
            pl.BlockSpec((Cr, C), lambda i: (0, 0)),            # w2
            pl.BlockSpec((C, CL), lambda i: (0, 0)),            # expand
        ],
        out_specs=pl.BlockSpec((block_rows, CL), lambda i: (i, 0)),
    )

    out2 = pl.pallas_call(
        _se_kernel,
        out_shape=jax.ShapeDtypeStruct((B, CL), x.dtype),
        grid_spec=grid_spec,
        input_output_aliases={0: 0},            # output may reuse x's HBM buffer
        cost_estimate=cost,
        compiler_params=pltpu.CompilerParams(
            dimension_semantics=("parallel",),  # batch blocks -> both TCs on v7x
            vmem_limit_bytes=vmem_limit,
        ),
    )(x2, pool, w1, w2, expand)
    return out2.reshape(B, C, L)


def reference_se(x, w1, w2):
    # Pure-JAX reference matching the PyTorch SELayer forward.
    y = x.mean(axis=2)
    h = jnp.maximum(y @ w1, 0.0)
    s = jax.nn.sigmoid(h @ w2)
    return x * s[:, :, None]


if __name__ == "__main__":
    # Shapes consistent with sensorNET: SELayer(channel=32, reduction=16)
    # applied to a (batch, 32, length) conv feature map.  Small demo sizes;
    # C*L = 512 keeps the flattened layout an exact multiple of 128 lanes.
    B, C, L = 64, 32, 16
    reduction = 16
    Cr = max(1, C // reduction)

    key = jax.random.PRNGKey(0)
    kx, k1, k2 = jax.random.split(key, 3)
    x = jax.random.normal(kx, (B, C, L), dtype=jnp.float32)
    # nn.Linear-style weights (bias=False), stored pre-transposed for y @ W.T.
    w1 = jax.random.uniform(k1, (C, Cr), jnp.float32,
                            minval=-1.0 / jnp.sqrt(C), maxval=1.0 / jnp.sqrt(C))
    w2 = jax.random.uniform(k2, (Cr, C), jnp.float32,
                            minval=-1.0 / jnp.sqrt(Cr), maxval=1.0 / jnp.sqrt(Cr))

    # Reference computed first (the kernel may alias/donate x's buffer).
    ref = reference_se(x, w1, w2)

    # block_rows=16 -> a 4-step pipelined grid (exercises the multi-block path).
    out = se_layer(x, w1, w2, block_rows=16)
    out = jax.block_until_ready(out)

    assert out.shape == (B, C, L) and out.dtype == x.dtype
    # Pooling / gating run through the MXU inside the kernel; tolerance covers
    # hardware matmul rounding (typically ~1e-6, bounded well below 5e-3 even
    # if the MXU uses bf16 passes for f32 operands).
    assert jnp.allclose(out, ref, atol=5e-3, rtol=5e-3), (
        f"max abs diff = {jnp.max(jnp.abs(out - ref))}")
    print("KERNEL_OK")
</pallas_src>

<mosaic_0001>
module attributes {stable_mosaic.version = 11 : i64} {
  func.func @_se_kernel(%arg0: i32, %arg1: memref<16x512xf32, #tpu.memory_space<vmem>>, %arg2: memref<512x32xf32, #tpu.memory_space<vmem>>, %arg3: memref<32x2xf32, #tpu.memory_space<vmem>>, %arg4: memref<2x32xf32, #tpu.memory_space<vmem>>, %arg5: memref<32x512xf32, #tpu.memory_space<vmem>>, %arg6: memref<16x512xf32, #tpu.memory_space<vmem>>) attributes {dimension_semantics = [#tpu.dimension_semantics<parallel>], iteration_bounds = array<i64: 4>, scalar_prefetch = 0 : i64, scratch_operands = 0 : i64, tpu.core_type = #tpu.core_type<tc>, window_params = [{transform_indices = @transform_0, window_bounds = array<i64: 16, 512>}, {pipeline_mode = #tpu.pipeline_mode<synchronous>, transform_indices = @transform_1, window_bounds = array<i64: 512, 32>}, {pipeline_mode = #tpu.pipeline_mode<synchronous>, transform_indices = @transform_2, window_bounds = array<i64: 32, 2>}, {pipeline_mode = #tpu.pipeline_mode<synchronous>, transform_indices = @transform_3, window_bounds = array<i64: 2, 32>}, {pipeline_mode = #tpu.pipeline_mode<synchronous>, transform_indices = @transform_4, window_bounds = array<i64: 32, 512>}, {transform_indices = @transform_5, window_bounds = array<i64: 16, 512>}]} {
    %c0 = arith.constant 0 : index
    %c0_0 = arith.constant 0 : index
    %0 = vector.load %arg1[%c0, %c0_0] : memref<16x512xf32, #tpu.memory_space<vmem>>, vector<16x512xf32>
    %c0_1 = arith.constant 0 : index
    %c0_2 = arith.constant 0 : index
    %1 = vector.load %arg2[%c0_1, %c0_2] : memref<512x32xf32, #tpu.memory_space<vmem>>, vector<512x32xf32>
    %cst = arith.constant dense<0.000000e+00> : vector<16x32xf32>
    %2 = tpu.matmul %0, %1, %cst {dimension_numbers = #tpu.dot_dimension_numbers<[1], [0], [0], [1], [0, 0, 1, 1], [], []>} : vector<16x512xf32>, vector<512x32xf32>, vector<16x32xf32> -> vector<16x32xf32>
    %c0_3 = arith.constant 0 : index
    %c0_4 = arith.constant 0 : index
    %3 = vector.load %arg3[%c0_3, %c0_4] : memref<32x2xf32, #tpu.memory_space<vmem>>, vector<32x2xf32>
    %cst_5 = arith.constant dense<0.000000e+00> : vector<16x2xf32>
    %4 = tpu.matmul %2, %3, %cst_5 {dimension_numbers = #tpu.dot_dimension_numbers<[1], [0], [0], [1], [0, 0, 1, 1], [], []>} : vector<16x32xf32>, vector<32x2xf32>, vector<16x2xf32> -> vector<16x2xf32>
    %cst_6 = arith.constant 0.000000e+00 : f32
    %5 = vector.broadcast %cst_6 : f32 to vector<16x2xf32>
    %6 = arith.maximumf %4, %5 : vector<16x2xf32>
    %c0_7 = arith.constant 0 : index
    %c0_8 = arith.constant 0 : index
    %7 = vector.load %arg4[%c0_7, %c0_8] : memref<2x32xf32, #tpu.memory_space<vmem>>, vector<2x32xf32>
    %cst_9 = arith.constant dense<0.000000e+00> : vector<16x32xf32>
    %8 = tpu.matmul %6, %7, %cst_9 {dimension_numbers = #tpu.dot_dimension_numbers<[1], [0], [0], [1], [0, 0, 1, 1], [], []>} : vector<16x2xf32>, vector<2x32xf32>, vector<16x32xf32> -> vector<16x32xf32>
    %9 = arith.negf %8 : vector<16x32xf32>
    %10 = math.exp %9 : vector<16x32xf32>
    %cst_10 = arith.constant 1.000000e+00 : f32
    %11 = vector.broadcast %cst_10 : f32 to vector<16x32xf32>
    %12 = arith.addf %11, %10 : vector<16x32xf32>
    %13 = arith.divf %11, %12 : vector<16x32xf32>
    %c0_11 = arith.constant 0 : index
    %c0_12 = arith.constant 0 : index
    %14 = vector.load %arg5[%c0_11, %c0_12] : memref<32x512xf32, #tpu.memory_space<vmem>>, vector<32x512xf32>
    %cst_13 = arith.constant dense<0.000000e+00> : vector<16x512xf32>
    %15 = tpu.matmul %13, %14, %cst_13 {dimension_numbers = #tpu.dot_dimension_numbers<[1], [0], [0], [1], [0, 0, 1, 1], [], []>} : vector<16x32xf32>, vector<32x512xf32>, vector<16x512xf32> -> vector<16x512xf32>
    %c0_14 = arith.constant 0 : index
    %c0_15 = arith.constant 0 : index
    %16 = vector.load %arg1[%c0_14, %c0_15] : memref<16x512xf32, #tpu.memory_space<vmem>>, vector<16x512xf32>
    %17 = arith.mulf %16, %15 : vector<16x512xf32>
    %c0_16 = arith.constant 0 : index
    %c0_17 = arith.constant 0 : index
    %18 = vector.load %arg6[%c0_16, %c0_17] : memref<16x512xf32, #tpu.memory_space<vmem>>, vector<16x512xf32>
    tpu.vector_store %arg6[%c0_16, %c0_17], %17 {strides = array<i32>} : memref<16x512xf32, #tpu.memory_space<vmem>>, vector<16x512xf32>,
    return
  }
  func.func @transform_0(%arg0: i32) -> (i32, i32) {
    %c0_i32 = arith.constant 0 : i32
    %c0_i32_0 = arith.constant 0 : i32
    return %arg0, %c0_i32 : i32, i32
  }
  func.func @transform_1(%arg0: i32) -> (i32, i32) {
    %c0_i32 = arith.constant 0 : i32
    %c0_i32_0 = arith.constant 0 : i32
    %c0_i32_1 = arith.constant 0 : i32
    return %c0_i32, %c0_i32_0 : i32, i32
  }
  func.func @transform_2(%arg0: i32) -> (i32, i32) {
    %c0_i32 = arith.constant 0 : i32
    %c0_i32_0 = arith.constant 0 : i32
    %c0_i32_1 = arith.constant 0 : i32
    return %c0_i32, %c0_i32_0 : i32, i32
  }
  func.func @transform_3(%arg0: i32) -> (i32, i32) {
    %c0_i32 = arith.constant 0 : i32
    %c0_i32_0 = arith.constant 0 : i32
    %c0_i32_1 = arith.constant 0 : i32
    return %c0_i32, %c0_i32_0 : i32, i32
  }
  func.func @transform_4(%arg0: i32) -> (i32, i32) {
    %c0_i32 = arith.constant 0 : i32
    %c0_i32_0 = arith.constant 0 : i32
    %c0_i32_1 = arith.constant 0 : i32
    return %c0_i32, %c0_i32_0 : i32, i32
  }
  func.func @transform_5(%arg0: i32) -> (i32, i32) {
    %c0_i32 = arith.constant 0 : i32
    %c0_i32_0 = arith.constant 0 : i32
    return %arg0, %c0_i32 : i32, i32
  }
}

</mosaic_0001>

<bundles_post_ra>
// kernel: tpu_custom_call.1
= control target key start
LH: loop header
LB: loop body
LE: loop exit
PB: predicated region body
PF: predicated region fallthrough
CT: control target
= control target key end

     0   :  { %10 = vsyncpa [#allocation3], 0  ;;  %s1816_s0 = inlined_call_operand.hbm [shape: f32[64,512], index: 0, kind: input, shape index: {}, may-alias: {0,5}]   ;;  %s1817_s1 = inlined_call_operand.vmem [shape: f32[512,32], index: 1, kind: input, shape index: {}]   ;;  %s1818_s2 = inlined_call_operand.vmem [shape: f32[32,2], index: 2, kind: input, shape index: {}]   ;;  %s1819_s3 = inlined_call_operand.vmem [shape: f32[2,32], index: 3, kind: input, shape index: {}]   ;;  %s1820_s4 = inlined_call_operand.vmem [shape: f32[32,512], index: 4, kind: input, shape index: {}]   ;;  %s1821_s5 = inlined_call_operand.hbm [shape: f32[64,512], index: 5, kind: output, shape index: {}, may-alias: {0,5}]  }
   0x1   :  { %12 = vsyncpa [#allocation3 + $0x1], 0 }
   0x2   :  { %13 = vsyncpa [#allocation4], 0 }
   0x3   :  { %15 = vsyncpa [#allocation4 + $0x1], 0  ;;  %s1349_s18 = smov 0   ;;  %s1351_s19 = smov 0  }
   0x4   :  { %s1353_s20 = smov 0   ;;  %s1355_s21 = smov 0  }
   0x5 LB: > { %s1370_s22 = sadd.s32 4294967295, %s1310_s21   ;;  %s935_s23 = sadd.s32 4294967294, %s1310_s21   ;;  %s1310_s21 = sphi %s1355_s21, %s1833_s21   ;;  %s1306_s20 = sphi %s1353_s20, %s1832_s20   ;;  %s1302_s19 = sphi %s1351_s19, %s1831_s19   ;;  %s1298_s18 = sphi %s1349_s18, %s1830_s18  }
   0x6   : > { %s1374_s24 = sadd.s32 1, %s1310_s21   ;;  %s28_s25 = sadd.s32 1, %s1306_s20 }
   0x7   : > { %s25_s26 = ssub.s32 %s1310_s21, %s1374_s24  ;;  %p35_p0 = scmp.ne.s32.totalorder %s1306_s20, %s1302_s19 }
   0x8   : > { %p26_p1 = scmp.eq.s32.totalorder %s25_s26, 0  ;;  %p36_p2 = scmp.eq.s32.totalorder %s1310_s21, 0 }
   0x9   : > { %p41_p3 = scmp.ne.s32.totalorder %s1302_s19, %s1298_s18  ;;  %p42_p4 = scmp.eq.s32.totalorder %s1370_s22, 0 }
   0xa   : > { %s1386_s27 = scalar_select %p26_p1, %s1306_s20, %s28_s25  }
   0xb   : > { %p1388_p5 = por %p36_p2, %p35_p0  ;;  %p1392_p6 = por %p42_p4, %p41_p3 }
   0xc   : > { %p149_p7 = scmp.eq.s32.totalorder %s1370_s22, 3  ;;  %p155_p8 = scmp.eq.s32.totalorder %s935_s23, 3 }
   0xd   : > { %p1167_p9 = scmp.lt.s32.totalorder %s1310_s21, 4  ;;  %s187_s7 = sand.u32 1, %s1306_s20  }
   0xe   : > { %p1398_p10 = por %p149_p7, %p35_p0  ;;  %p1402_p11 = por %p155_p8, %p41_p3 }
   0xf   : > { %s963_s8 = sshll.u32 %s1310_s21, 10  ;;  %s938_s9 = sshll.u32 %s187_s7, 6 }
  0x10   : > { %s1825_s30 = scalar_select %p1398_p10, 1, 0 }
  0x11   : > { %s1826_s6 = scalar_select %p1402_p11, 1, 0 }
  0x12   : > { %s1411_s12 = scalar_lea.hbm %s1816_s0, %s963_s8  ;;  %s191_s13 = scalar_lea.vmem [#allocation2], %s938_s9 }
  0x13   : > { %s199_s14 = sshll.u32 %s191_s13, 4  ;;  %p1415_p12 = pnand %p1167_p9, %p1388_p5  ;;  %s1419_s14 = int_to_ptr.vmem [resolvable:$true] %s199_s14 }
  0x14   : > { %s1421_s16 = scalar_lea.sflag [#allocation3], %s187_s7  ;;  %s1214_s17 = scalar_lea.hbm %s1411_s12, 1024 }
  0x15   : > { %p1215_p13 = scmp.ne.s32.totalorder %s1411_s12, %s1214_s17  ;;  %p1216_p0 = pneg %p1415_p12 }
  0x16   : > { %s1219_s26 = scalar_lea.hbm %s1816_s0, 4096  ;;  %p1220_p3 = scmp.lt.u32.totalorder %s1411_s12, %s1816_s0 }
  0x17   : > { %p1217_p1 = pnand %p1216_p0, %p1215_p13  ;;  %p1221_p4 = scmp.lt.u32.totalorder %s1219_s26, %s1214_s17 }
  0x18   : > { %p1223_p7 = scmp.lt.u32.totalorder %s1214_s17, %s1411_s12 }
  0x19   : > { %p1218_p2 = pneg %p1217_p1  ;;  %p1222_p5 = por %p1221_p4, %p1220_p3 }
  0x1b   : > { %p1224_p8 = por %p1223_p7, %p1222_p5 }
  0x1d   : > { %p1225_p9 = pnand %p1224_p8, %p1218_p2 }
  0x1f   : > { %1228 = shalt.err (!%p1225_p9)
}
  0x20   : > { %s1229_s7 = scalar_lea.vmem %s1419_s14, 1024  ;;  %s1312_s9 = smov [#allocation2]  }
  0x21   : > { %p1230_p13 = scmp.ne.s32.totalorder %s1419_s14, %s1229_s7  ;;  %s1234_s10 = sshll.u32 %s1312_s9, 4  ;;  %s1235_s10 = int_to_ptr.vmem [resolvable:$false] %s1234_s10 }
  0x22   : > { %s1236_s11 = scalar_lea.vmem %s1235_s10, 2048  ;;  %p1237_p10 = scmp.lt.s32.totalorder %s1419_s14, %s1235_s10 }
  0x23   : > { %p1232_p1 = pnand %p1230_p13, %p1216_p0  ;;  %p1238_p3 = scmp.lt.s32.totalorder %s1236_s11, %s1229_s7 }
  0x25   : > { %p1233_p11 = pneg %p1232_p1  ;;  %p1239_p4 = por %p1238_p3, %p1237_p10 }
  0x27   : > { %p1240_p5 = pnand %p1239_p4, %p1233_p11 }
  0x29   : > { %1243 = shalt.err (!%p1240_p5)
}
  0x2a   : > { %s1313_s13 = smov 512   ;;  %s1314_s17 = smov 32  }
  0x2b   : > { %1162 = dma.hbm_to_vmem [thread:$0]  (!%p1415_p12), %s1411_s12, 1024, %s1419_s14, %s1421_s16, %s1313_s13, %s1313_s13, %s1314_s17  }
  0x2c   : > { %p942_p0 = scmp.ge.s32.totalorder %s1310_s21, 1  ;;  %p207_p2 = scmp.lt.s32.totalorder %s1310_s21, 5 }
  0x2e   : > { %p208_p7 = pnand %p942_p0, %p207_p2 }
  0x2f   : > { %s1452_s23 = sand.u32 (!%p208_p7), 1, %s1302_s19  }
  0x30   : > { %211 = sbr.rel (%p208_p7) target bundleno = 1003 (0x3eb), region = 40  ;;  %s943_s25 = sshll.u32 (!%p208_p7), %s1452_s23, 6 }
  0x31   : > { %s214_s26 = scalar_lea.sflag (!%p208_p7), [#allocation3], %s1452_s23  ;;  %s1458_s28 = scalar_lea.vmem (!%p208_p7), [#allocation2], %s943_s25 }
  0x37   : > { %1289 = dma.done.wait (%p1392_p6), %s214_s26, 1024  }
  0x38   : > { %1291 = vsyncadd (%p1392_p6), %s214_s26, 4294966272  ;;  %v270_v0 = vld [vmem:[%s1817_s1 + $0x80] sm:$0xff]  ;;  %v271_v1 = vld [vmem:[%s1817_s1 + $0x88] sm:$0xff]  ;;  %vm564_vm0 = vcmask 1041408   ;;  %vm472_vm1 = vcmask 261120   ;;  %vm557_vm2 = vcmask 15360  }
  0x39   : > { %v302_v2 = vld [vmem:[%s1817_s1 + $0x180] sm:$0xff]  ;;  %v1067_v3 = vpack.c.bf16 %v271_v1, %v270_v0  ;;  %v303_v4 = vld [vmem:[%s1817_s1 + $0x188] sm:$0xff]  ;;  %v272_v11 = vld [vmem:[%s1817_s1 + $0x90] sm:$0xff]  ;;  %s243_s17 = scalar_lea.vmem [#allocation5], %s943_s25  ;;  %s965_s12 = sshll.u32 %s1370_s22, 10 }
  0x3a   : > { %v254_v5 = vld [vmem:[%s1817_s1] sm:$0xff]  ;;  %v255_v6 = vld [vmem:[%s1817_s1 + $0x8] sm:$0xff]  ;;  %v1099_v7 = vpack.c.bf16 %v303_v4, %v302_v2  ;;  %v273_v13 = vld [vmem:[%s1817_s1 + $0x98] sm:$0xff]  ;;  %s862_s26 = sshll.u32 %s243_s17, 4  ;;  %s1771_s14 = scalar_lea.hbm %s1821_s5, %s965_s12  ;;  %s1764_s26 = int_to_ptr.vmem [resolvable:$true] %s862_s26 }
  0x3b   : > { %v1069_v8 = vpack.c.bf16 %v255_v6, %v254_v5  ;;  %v286_v9 = vld [vmem:[%s1817_s1 + $0x100] sm:$0xff]  ;;  %v287_v10 = vld [vmem:[%s1817_s1 + $0x108] sm:$0xff]  ;;  %1068 = vmatprep.subr.bf16.mxu0 %v1067_v3  ;;  %v304_v14 = vld [vmem:[%s1817_s1 + $0x190] sm:$0xff]  ;;  %v1071_v16 = vpack.c.bf16 %v273_v13, %v272_v11  ;;  %s848_s15 = scalar_lea.sflag [#allocation4], %s1452_s23  ;;  %s1244_s16 = scalar_lea.vmem %s1764_s26, 1024 }
  0x3c   : > { %v1101_v12 = vpack.c.bf16 %v287_v10, %v286_v9  ;;  %v305_v15 = vld [vmem:[%s1817_s1 + $0x198] sm:$0xff]  ;;  %1100 = vmatprep.subr.bf16.mxu1 %v1099_v7  ;;  %v256_v18 = vld [vmem:[%s1817_s1 + $0x10] sm:$0xff]  ;;  %v274_v23 = vld [vmem:[%s1817_s1 + $0xa0] sm:$0xff]  ;;  %p1245_p6 = scmp.ne.s32.totalorder %s1764_s26, %s1244_s16  ;;  %p1828_p10 = scmp.ne.s32.totalorder %s1825_s30, 0 }
  0x3d   : > { %1070 = vmatpush3.bf16.msra.mxu0 %v1069_v8  ;;  %v1103_v17 = vpack.c.bf16 %v305_v15, %v304_v14  ;;  %v257_v19 = vld [vmem:[%s1817_s1 + $0x18] sm:$0xff]  ;;  %v288_v20 = vld [vmem:[%s1817_s1 + $0x110] sm:$0xff]  ;;  %v275_v24 = vld [vmem:[%s1817_s1 + $0xa8] sm:$0xff] }
  0x3e   : > { %1102 = vmatpush3.bf16.msra.mxu1 %v1101_v12  ;;  %v1073_v21 = vpack.c.bf16 %v257_v19, %v256_v18  ;;  %v289_v22 = vld [vmem:[%s1817_s1 + $0x118] sm:$0xff]  ;;  %1072 = vmatprep.subr.bf16.mxu0 %v1071_v16  ;;  %v1075_v26 = vpack.c.bf16 %v275_v24, %v274_v23  ;;  %v306_v27 = vld [vmem:[%s1817_s1 + $0x1a0] sm:$0xff]  ;;  %v307_v28 = vld [vmem:[%s1817_s1 + $0x1a8] sm:$0xff]  ;;  %p1246_p11 = pnand %p1245_p6, %p1828_p10 }
  0x3f   : > { %1104 = vmatprep.subr.bf16.mxu1 %v1103_v17  ;;  %v1105_v25 = vpack.c.bf16 %v289_v22, %v288_v20  ;;  %v258_v29 = vld [vmem:[%s1817_s1 + $0x20] sm:$0xff]  ;;  %v1107_v30 = vpack.c.bf16 %v307_v28, %v306_v27  ;;  %v259_v31 = vld [vmem:[%s1817_s1 + $0x28] sm:$0xff]  ;;  %v276_v35 = vld [vmem:[%s1817_s1 + $0xb0] sm:$0xff] }
  0x40   : > { %v290_v32 = vld [vmem:[%s1817_s1 + $0x120] sm:$0xff]  ;;  %v291_v33 = vld [vmem:[%s1817_s1 + $0x128] sm:$0xff]  ;;  %v1077_v34 = vpack.c.bf16 %v259_v31, %v258_v29  ;;  %v277_v36 = vld [vmem:[%s1817_s1 + $0xb8] sm:$0xff]  ;;  %p1247_p12 = pneg %p1246_p11 }
  0x41   : > { %1074 = vmatpush3.bf16.msra.mxu0 %v1073_v21  ;;  %v308_v37 = vld [vmem:[%s1817_s1 + $0x1b0] sm:$0xff]  ;;  %v1109_v38 = vpack.c.bf16 %v291_v33, %v290_v32  ;;  %v1079_v39 = vpack.c.bf16 %v277_v36, %v276_v35  ;;  %v309_v40 = vld [vmem:[%s1817_s1 + $0x1b8] sm:$0xff]  ;;  %v278_v46 = vld [vmem:[%s1817_s1 + $0xc0] sm:$0xff] }
  0x42   : > { %1106 = vmatpush3.bf16.msra.mxu1 %v1105_v25  ;;  %1076 = vmatprep.subr.bf16.mxu0 %v1075_v26  ;;  %v260_v41 = vld [vmem:[%s1817_s1 + $0x30] sm:$0xff]  ;;  %v261_v42 = vld [vmem:[%s1817_s1 + $0x38] sm:$0xff]  ;;  %v1111_v43 = vpack.c.bf16 %v309_v40, %v308_v37  ;;  %v279_v47 = vld [vmem:[%s1817_s1 + $0xc8] sm:$0xff] }
  0x43   : > { %1108 = vmatprep.subr.bf16.mxu1 %v1107_v30  ;;  %v292_v44 = vld [vmem:[%s1817_s1 + $0x130] sm:$0xff]  ;;  %v293_v45 = vld [vmem:[%s1817_s1 + $0x138] sm:$0xff]  ;;  %v310_v48 = vld [vmem:[%s1817_s1 + $0x1c0] sm:$0xff]  ;;  %v1081_v50 = vpack.c.bf16 %v261_v42, %v260_v41  ;;  %v1083_v52 = vpack.c.bf16 %v279_v47, %v278_v46 }
  0x44   : > { %v311_v49 = vld [vmem:[%s1817_s1 + $0x1c8] sm:$0xff]  ;;  %v1113_v51 = vpack.c.bf16 %v293_v45, %v292_v44  ;;  %v262_v53 = vld [vmem:[%s1817_s1 + $0x40] sm:$0xff]  ;;  %v280_v58 = vld [vmem:[%s1817_s1 + $0xd0] sm:$0xff] }
  0x45   : > { %1078 = vmatpush3.bf16.msra.mxu0 %v1077_v34  ;;  %v263_v54 = vld [vmem:[%s1817_s1 + $0x48] sm:$0xff]  ;;  %v294_v55 = vld [vmem:[%s1817_s1 + $0x140] sm:$0xff]  ;;  %v1115_v56 = vpack.c.bf16 %v311_v49, %v310_v48  ;;  %v281_v59 = vld [vmem:[%s1817_s1 + $0xd8] sm:$0xff] }
  0x46   : > { %1110 = vmatpush3.bf16.msra.mxu1 %v1109_v38  ;;  %1080 = vmatprep.subr.bf16.mxu0 %v1079_v39  ;;  %v295_v57 = vld [vmem:[%s1817_s1 + $0x148] sm:$0xff]  ;;  %v312_v60 = vld [vmem:[%s1817_s1 + $0x1d0] sm:$0xff]  ;;  %v313_v61 = vld [vmem:[%s1817_s1 + $0x1d8] sm:$0xff]  ;;  %v1085_v62 = vpack.c.bf16 %v263_v54, %v262_v53  ;;  %v1087_v0 = vpack.c.bf16 %v281_v59, %v280_v58 }
  0x47   : > { %1112 = vmatprep.subr.bf16.mxu1 %v1111_v43  ;;  %v1117_v63 = vpack.c.bf16 %v295_v57, %v294_v55  ;;  %v264_v1 = vld [vmem:[%s1817_s1 + $0x50] sm:$0xff]  ;;  %v265_v2 = vld [vmem:[%s1817_s1 + $0x58] sm:$0xff]  ;;  %v1119_v4 = vpack.c.bf16 %v313_v61, %v312_v60  ;;  %v282_v6 = vld [vmem:[%s1817_s1 + $0xe0] sm:$0xff] }
  0x48   : > { %v296_v3 = vld [vmem:[%s1817_s1 + $0x150] sm:$0xff]  ;;  %v297_v5 = vld [vmem:[%s1817_s1 + $0x158] sm:$0xff]  ;;  %v283_v7 = vld [vmem:[%s1817_s1 + $0xe8] sm:$0xff]  ;;  %v1089_v10 = vpack.c.bf16 %v265_v2, %v264_v1 }
  0x49   : > { %1082 = vmatpush3.bf16.msra.mxu0 %v1081_v50  ;;  %v314_v8 = vld [vmem:[%s1817_s1 + $0x1e0] sm:$0xff]  ;;  %v315_v9 = vld [vmem:[%s1817_s1 + $0x1e8] sm:$0xff]  ;;  %v1121_v13 = vpack.c.bf16 %v297_v5, %v296_v3  ;;  %v1091_v14 = vpack.c.bf16 %v283_v7, %v282_v6  ;;  %v1633_v17 = vld [vmem:[%s1458_s28 + $0x18] sm:$0xff] }
  0x4a   : > { %1114 = vmatpush3.bf16.msra.mxu1 %v1113_v51  ;;  %1084 = vmatprep.subr.bf16.mxu0 %v1083_v52  ;;  %v266_v11 = vld [vmem:[%s1817_s1 + $0x60] sm:$0xff]  ;;  %v267_v12 = vld [vmem:[%s1817_s1 + $0x68] sm:$0xff]  ;;  %v1123_v18 = vpack.c.bf16 %v315_v9, %v314_v8  ;;  %v284_v20 = vld [vmem:[%s1817_s1 + $0xf0] sm:$0xff]  ;;  %v1315_v8 = vmov 0.0  }
  0x4b   : > { %1116 = vmatprep.subr.bf16.mxu1 %v1115_v56  ;;  %v298_v15 = vld [vmem:[%s1817_s1 + $0x160] sm:$0xff]  ;;  %v1630_v16 = vld [vmem:[%s1458_s28 + $0x8] sm:$0xff]  ;;  %v285_v21 = vld [vmem:[%s1817_s1 + $0xf8] sm:$0xff]  ;;  %457 = vmatprep.mubr.f32.mxu1 %v1633_v17  ;;  %v1093_v24 = vpack.c.bf16 %v267_v12, %v266_v11 }
  0x4c   : > { %v299_v19 = vld [vmem:[%s1817_s1 + $0x168] sm:$0xff]  ;;  %382 = vmatprep.mubr.f32.mxu0 %v1630_v16  ;;  %v316_v22 = vld [vmem:[%s1817_s1 + $0x1f0] sm:$0xff]  ;;  %v317_v23 = vld [vmem:[%s1817_s1 + $0x1f8] sm:$0xff]  ;;  %v1095_v26 = vpack.c.bf16 %v285_v21, %v284_v20 }
  0x4d   : > { %1086 = vmatpush3.bf16.msra.mxu0 %v1085_v62  ;;  %v1125_v25 = vpack.c.bf16 %v299_v19, %v298_v15  ;;  %v268_v27 = vld [vmem:[%s1817_s1 + $0x70] sm:$0xff]  ;;  %v269_v28 = vld [vmem:[%s1817_s1 + $0x78] sm:$0xff]  ;;  %v1127_v29 = vpack.c.bf16 %v317_v23, %v316_v22  ;;  %v1665_v34 = vld [vmem:[%s1458_s28] sm:$0xff] }
  0x4e   : > { %1118 = vmatpush3.bf16.msra.mxu1 %v1117_v63  ;;  %1088 = vmatprep.subr.bf16.mxu0 %v1087_v0  ;;  %v300_v30 = vld [vmem:[%s1817_s1 + $0x170] sm:$0xff]  ;;  %v301_v31 = vld [vmem:[%s1817_s1 + $0x178] sm:$0xff]  ;;  %v1097_v32 = vpack.c.bf16 %v269_v28, %v268_v27  ;;  %v1671_v36 = vld [vmem:[%s1458_s28 + $0x28] sm:$0xff] }
  0x4f   : > { %1120 = vmatprep.subr.bf16.mxu1 %v1119_v4  ;;  %v1129_v33 = vpack.c.bf16 %v301_v31, %v300_v30  ;;  %v1668_v35 = vld [vmem:[%s1458_s28 + $0x10] sm:$0xff]  ;;  %v1674_v37 = vld [vmem:[%s1458_s28 + $0x38] sm:$0xff]  ;;  %v1680_v38 = vld [vmem:[%s1458_s28 + $0x20] sm:$0xff] }
  0x50   : > { %v1684_v39 = vld [vmem:[%s1458_s28 + $0x30] sm:$0xff]  ;;  %v468_v40 = vld [vmem:[%s1818_s2] sm:$0xff]  ;;  %v469_v41 = vld [vmem:[%s1818_s2 + $0x8] sm:$0xff]  ;;  %s1316_s28 = smov [#allocation5]  }
  0x51   : > { %1090 = vmatpush3.bf16.msra.mxu0 %v1089_v10  ;;  %v1131_v42 = vpack.c.bf16 %v469_v41, %v468_v40  ;;  %v470_v43 = vld [vmem:[%s1818_s2 + $0x10] sm:$0xff]  ;;  %v471_v44 = vld [vmem:[%s1818_s2 + $0x18] sm:$0xff]  ;;  %v556_v46 = vld [vmem:[%s1819_s3] sm:$0x3]  ;;  %s1248_s8 = sshll.u32 %s1316_s28, 4  ;;  %s1249_s8 = int_to_ptr.vmem [resolvable:$false] %s1248_s8 }
  0x52   : > { %1122 = vmatpush3.bf16.msra.mxu1 %v1121_v13  ;;  %1092 = vmatprep.subr.bf16.mxu0 %v1091_v14  ;;  %v1135_v45 = vpack.c.bf16 %v471_v44, %v470_v43  ;;  %v656_v1 = vld [vmem:[%s1820_s4 + $0x8] sm:$0xff]  ;;  %v658_v3 = vld [vmem:[%s1820_s4 + $0x18] sm:$0xff]  ;;  %v655_v6 = vld [vmem:[%s1820_s4] sm:$0xff]  ;;  %s1250_s7 = scalar_lea.vmem %s1249_s8, 2048  ;;  %p1251_p8 = scmp.lt.s32.totalorder %s1764_s26, %s1249_s8 }
  0x53   : > { %1124 = vmatprep.subr.bf16.mxu1 %v1123_v18  ;;  %v660_v2 = vld [vmem:[%s1820_s4 + $0x28] sm:$0xff]  ;;  %v662_v5 = vld [vmem:[%s1820_s4 + $0x38] sm:$0xff]  ;;  %v659_v7 = vld [vmem:[%s1820_s4 + $0x20] sm:$0xff]  ;;  %p1252_p9 = scmp.lt.s32.totalorder %s1250_s7, %s1244_s16 }
  0x54   : > { %v1139_v4 = vpack.c.bf16 %v660_v2, %v656_v1  ;;  %v1147_v9 = vpack.c.bf16 %v662_v5, %v658_v3  ;;  %v1141_v10 = vpack.c.bf16 %v659_v7, %v655_v6  ;;  %v657_v11 = vld [vmem:[%s1820_s4 + $0x10] sm:$0xff]  ;;  %v664_v13 = vld [vmem:[%s1820_s4 + $0x48] sm:$0xff]  ;;  %v666_v18 = vld [vmem:[%s1820_s4 + $0x58] sm:$0xff] }
  0x55   : > { %1094 = vmatpush3.bf16.msra.mxu0 %v1093_v24  ;;  %v661_v12 = vld [vmem:[%s1820_s4 + $0x30] sm:$0xff]  ;;  %v668_v15 = vld [vmem:[%s1820_s4 + $0x68] sm:$0xff]  ;;  %v670_v19 = vld [vmem:[%s1820_s4 + $0x78] sm:$0xff]  ;;  %p1253_p13 = por %p1252_p9, %p1251_p8 }
  0x56   : > { %1126 = vmatpush3.bf16.msra.mxu1 %v1125_v25  ;;  %1096 = vmatprep.subr.bf16.mxu0 %v1095_v26  ;;  %v1149_v14 = vpack.c.bf16 %v661_v12, %v657_v11  ;;  %v1143_v20 = vpack.c.bf16 %v668_v15, %v664_v13  ;;  %v1151_v21 = vpack.c.bf16 %v670_v19, %v666_v18  ;;  %v663_v22 = vld [vmem:[%s1820_s4 + $0x40] sm:$0xff]  ;;  %v665_v24 = vld [vmem:[%s1820_s4 + $0x50] sm:$0xff] }
  0x57   : > { %1128 = vmatprep.subr.bf16.mxu1 %v1127_v29  ;;  %v667_v23 = vld [vmem:[%s1820_s4 + $0x60] sm:$0xff]  ;;  %v669_v26 = vld [vmem:[%s1820_s4 + $0x70] sm:$0xff]  ;;  %p1254_p1 = pnand %p1253_p13, %p1247_p12 }
  0x58   : > { %v1145_v25 = vpack.c.bf16 %v667_v23, %v663_v22  ;;  %v1153_v27 = vpack.c.bf16 %v669_v26, %v665_v24 }
  0x59   : > { %1098 = vmatpush3.bf16.msra.mxu0 %v1097_v32 }
  0x5a   : > { %1130 = vmatpush3.bf16.msra.mxu1 %v1129_v33  ;;  %1132 = vmatprep.subr.bf16.mxu0 %v1131_v42 }
  0x5b   : > { %1062 = vmatprep.subr.msk.mxu1 %vm564_vm0, %v556_v46 }
  0x5c   : > { %383 = vmatmul.mubr.f32.vlgmr.msra.gmra.mrb[0].mxu0 %v1665_v34 }
  0x5d   : > { %458 = vmatmul.mubr.f32.vlgmr.msra.gmra.mrb[0].mxu1 %v1668_v35  ;;  %387 = vmatprep.mubr.f32.mxu0 %v1671_v36 }
  0x5e   : > { %462 = vmatprep.mubr.f32.mxu1 %v1674_v37  ;;  %1134 = vmatpush3.bf16.msra.mxu0 %v1131_v42 }
  0x5f   : > { %1136 = vmatprep.subr.bf16.mxu0 %v1135_v45  ;;  %1063 = vmatpush3.msk.msra.mxu1 %vm564_vm0, %v556_v46 }
  0x60   : > { %388 = vmatmul.mubr.f32.gmra.mrb[2].mxu0 %v1680_v38  ;;  %1148 = vmatprep.subr.bf16.mxu1 %v1147_v9 }
  0x61   : > { %463 = vmatmul.mubr.f32.gmra.mrb[2].mxu1 %v1684_v39 }
  0x62   : > { %1138 = vmatpush3.bf16.msra.mxu0 %v1135_v45 }
  0x63   : > { %1140 = vmatprep.subr.bf16.mxu0 %v1139_v4 }
 0x12f   : > { %v998_v47 = vpop.f32.mrb[0].mxu0 }
 0x130   : > { %v1036_v48 = vpop.f32.mrb[0].mxu1  ;;  %v999_v49 = vpop.f32.mrb[1].mxu0 }
 0x131   : > { %v1000_v50 = vadd.f32 %v999_v49, %v998_v47  ;;  %v1037_v51 = vpop.f32.mrb[1].mxu1 }
 0x132   : > { %v1038_v52 = vadd.f32 %v1037_v51, %v1036_v48 }
 0x133   : > { %v1001_v53 = vpop.f32.mrb[2].mxu0 }
 0x134   : > { %v460_v54 = vadd.f32 %v1038_v52, %v1000_v50  ;;  %v1039_v55 = vpop.f32.mrb[2].mxu1  ;;  %v1002_v56 = vpop.f32.mrb[3].mxu0 }
 0x135   : > { %v1003_v57 = vadd.f32 %v1002_v56, %v1001_v53  ;;  %v1040_v58 = vpop.f32.mrb[3].mxu1 }
 0x136   : > { %v1041_v59 = vadd.f32 %v1040_v58, %v1039_v55  ;;  %1059 = vmatprep.mubr.msk.f32.mxu0 %vm472_vm1, %v460_v54 }
 0x138   : > { %v465_v60 = vadd.f32 %v1041_v59, %v1003_v57 }
 0x13a   : > { %1060 = vmatmul.mubr.msk.f32.vlgmr.msra.gmra.mrb[4].mxu0 %vm472_vm1, %v465_v60 }
 0x13b   : > { %741 = vmatprep.mubr.f32.mxu0 %v1315_v8  ;;  %1142 = vmatpush1.bf16.msra.mxu0 %v1141_v10 }
 0x13c   : > { %1144 = vmatprep.subr.bf16.mxu0 %v1143_v20 }
 0x13f   : > { %1146 = vmatpush1.bf16.msra.mxu0 %v1145_v25 }
 0x20d   : > { %v1061_v61 = vpop.f32.mrb[4].mxu0 }
 0x20e   : > { %v545_v62 = vpop.f32.mrb[5].mxu0  ;;  %v555_v0 = vmax.f32 %v1061_v61, 0.0 }
 0x20f   : > { %v554_v63 = vmax.f32 %v545_v62, 0.0 }
 0x211   : > { %1064 = vmatprep.mubr.msk.f32.mxu1 %vm557_vm2, %v554_v63 }
 0x212   : > { %1065 = vmatmul.mubr.msk.f32.vlgmr.msra.gmra.mrb[4].mxu1 %vm557_vm2, %v555_v0 }
 0x213   : > { %818 = vmatprep.mubr.f32.mxu1 %v1315_v8  ;;  %1150 = vmatpush1.bf16.msra.mxu1 %v1149_v14 }
 0x214   : > { %1152 = vmatprep.subr.bf16.mxu1 %v1151_v21 }
 0x217   : > { %1154 = vmatpush1.bf16.msra.mxu1 %v1153_v27 }
 0x2e5   : > { %v1066_v28 = vpop.f32.mrb[4].mxu1 }
 0x2e6   : > { %v951_v29 = vmul.f32 -1.442695, %v1066_v28  ;;  %v634_v30 = vpop.f32.mrb[5].mxu1 }
 0x2e7   : > { %v950_v31 = vmul.f32 -1.442695, %v634_v30 }
 0x2e8   : > { %1206 = vpow2.f32 %v951_v29 }
 0x2e9   : > { %1208 = vpow2.f32 %v950_v31 }
 0x2f2   : > { %v1207_v32 = vpop.eup %1206 }
 0x2f3   : > { %v1209_v33 = vpop.eup %1208  ;;  %v650_v41 = vadd.f32 1.0, %v1207_v32 }
 0x2f4   : > { %v649_v40 = vadd.f32 1.0, %v1209_v33 }
 0x2f6   : > { %1210 = vrcp.f32 %v649_v40 }
 0x2f7   : > { %1212 = vrcp.f32 %v650_v41 }
 0x300   : > { %v1211_v42 = vpop.eup %1210 }
 0x301   : > { %952 = vmatmul.mubr.msk.f32.vlgmr.msra.gmra.mrb[6].mxu0 %vm472_vm1, %v1211_v42  ;;  %954 = vmatmul.mubr.msk.f32.vlgmr.msra.gmra.mrb[6].mxu1 %vm472_vm1, %v1211_v42  ;;  %v1213_v43 = vpop.eup %1212 }
 0x302   : > { %747 = vmatprep.mubr.f32.mxu0 %v1315_v8  ;;  %824 = vmatprep.mubr.f32.mxu1 %v1315_v8 }
 0x305   : > { %953 = vmatmul.mubr.msk.f32.gmra.mrb[8].mxu0 %vm472_vm1, %v1213_v43  ;;  %955 = vmatmul.mubr.msk.f32.gmra.mrb[8].mxu1 %vm472_vm1, %v1213_v43 }
 0x3d4   : > { %v743_v44 = vpop.f32.mrb[6].mxu0  ;;  %v820_v45 = vpop.f32.mrb[6].mxu1 }
 0x3d5   : > { %v831_v46 = vmul.f32 %v743_v44, %v1665_v34  ;;  %v833_v47 = vmul.f32 %v820_v45, %v1668_v35  ;;  %v745_v48 = vpop.f32.mrb[7].mxu0  ;;  %v822_v49 = vpop.f32.mrb[7].mxu1 }
 0x3d6   : > { %v832_v50 = vmul.f32 %v745_v48, %v1630_v16  ;;  %v834_v51 = vmul.f32 %v822_v49, %v1633_v17 }
 0x3d7   : > { %839 = vst [vmem:[%s243_s17] sm:$0xff] %v831_v46  ;;  %841 = vst [vmem:[%s243_s17 + $0x10] sm:$0xff] %v833_v47 }
 0x3d8   : > { %840 = vst [vmem:[%s243_s17 + $0x8] sm:$0xff] %v832_v50  ;;  %842 = vst [vmem:[%s243_s17 + $0x18] sm:$0xff] %v834_v51  ;;  %v749_v34 = vpop.f32.mrb[8].mxu0  ;;  %v826_v52 = vpop.f32.mrb[8].mxu1 }
 0x3d9   : > { %v835_v35 = vmul.f32 %v749_v34, %v1680_v38  ;;  %v837_v53 = vmul.f32 %v826_v52, %v1684_v39  ;;  %v751_v16 = vpop.f32.mrb[9].mxu0  ;;  %v828_v54 = vpop.f32.mrb[9].mxu1 }
 0x3da   : > { %v836_v17 = vmul.f32 %v751_v16, %v1671_v36  ;;  %v838_v55 = vmul.f32 %v828_v54, %v1674_v37 }
 0x3db   : > { %843 = vst [vmem:[%s243_s17 + $0x20] sm:$0xff] %v835_v35  ;;  %845 = vst [vmem:[%s243_s17 + $0x30] sm:$0xff] %v837_v53 }
 0x3dc   : > { %844 = vst [vmem:[%s243_s17 + $0x28] sm:$0xff] %v836_v17  ;;  %846 = vst [vmem:[%s243_s17 + $0x38] sm:$0xff] %v838_v55 }
 0x3dd   : > { %1257 = shalt.err (!%p1254_p1)
}
 0x3de   : > { %s1258_s9 = scalar_lea.hbm %s1771_s14, 1024  ;;  %s1262_s29 = scalar_lea.hbm %s1821_s5, 4096 }
 0x3df   : > { %p1259_p3 = scmp.ne.s32.totalorder %s1771_s14, %s1258_s9  ;;  %p1263_p0 = scmp.lt.u32.totalorder %s1771_s14, %s1821_s5 }
 0x3e0   : > { %p1264_p2 = scmp.lt.u32.totalorder %s1262_s29, %s1258_s9  ;;  %p1266_p6 = scmp.lt.u32.totalorder %s1258_s9, %s1771_s14 }
 0x3e1   : > { %p1260_p4 = pnand %p1259_p3, %p1828_p10 }
 0x3e2   : > { %p1265_p7 = por %p1264_p2, %p1263_p0 }
 0x3e3   : > { %p1261_p5 = pneg %p1260_p4 }
 0x3e4   : > { %p1267_p11 = por %p1266_p6, %p1265_p7 }
 0x3e6   : > { %p1268_p12 = pnand %p1267_p11, %p1261_p5 }
 0x3e8   : > { %1271 = shalt.err (!%p1268_p12)
}
 0x3e9   : > { %s1317_s12 = smov 512   ;;  %s1318_s25 = smov 32  }
 0x3ea   : > { %1157 = dma.vmem_to_hbm [thread:$0]  (%p1828_p10), %s1764_s26, 1024, %s1771_s14, %s848_s15, %s1317_s12, %s1317_s12, %s1318_s25  }
 0x3eb PF: > { %p1168_p8 = scmp.ge.s32.totalorder %s1310_s21, 2  ;;  %s877_s22 = sand.u32 1, %s1298_s18  }
 0x3ec   : > { %p1829_p9 = scmp.ne.s32.totalorder %s1826_s6, 0  ;;  %s878_s16 = scalar_lea.sflag [#allocation4], %s877_s22 }
 0x3ee   : > { %p1164_p13 = pnand %p1168_p8, %p1829_p9 }
 0x3f0   : > { %1293 = dma.done.wait (!%p1164_p13), %s878_s16, 1024  }
 0x3f1   : > { %1295 = vsyncadd (!%p1164_p13), %s878_s16, 4294966272  ;;  %p18_p1 = scmp.ge.s32.totalorder %s1374_s24, 6   ;;  %s1830_s18 = smov %s1302_s19 }
 0x3f2   : > { %s1831_s19 = smov %s1306_s20  ;;  %s1832_s20 = smov %s1386_s27 }
 0x3f3   : > { %s1833_s21 = smov %s1374_s24  ;;  %20 = sbr.rel (!%p18_p1) target bundleno = 5 (0x5), region = 85 }
 0x3fa   :  { %883 = vsyncpa [#allocation3], 1 }
 0x3fb   :  { %885 = vsyncpa [#allocation3 + $0x1], 1 }
 0x3fc   :  { %886 = vsyncpa [#allocation4], 1 }
 0x3fd   :  { %888 = vsyncpa [#allocation4 + $0x1], 1 }

</bundles_post_ra>
